<compile_context>
chip_gen: v5e
topology: v5e:2x2
jax: 0.10.0
libtpu: 0.0.40
codegen_flags: <defaults>
</compile_context>

<pallas_src>
import jax
import jax.numpy as jnp
from jax.experimental import pallas as pl
from jax.experimental.pallas import tpu as pltpu

IN_FEATURES = 10  # static: torch.nn.Linear(10, 1)


def _round_up(v, m):
    return (v + m - 1) // m * m


def _pick_batch_tile(B, *, single_tile_max=1024, max_tb=2048):
    """Pick (tile_rows, num_tiles) for the batch axis.

    Small B  -> one fat tile (dispatch / per-step overhead regime).
    Large B  -> >=2 tiles (so v7x's megacore can shard the "parallel" axis)
                of at most `max_tb` rows each; tiles stay sublane-aligned (x8).
    """
    bp = _round_up(B, 8)
    if bp <= single_tile_max:
        return bp, 1
    num_tiles = max(2, pl.cdiv(bp, max_tb))
    tb = _round_up(pl.cdiv(bp, num_tiles), 8)
    return tb, pl.cdiv(B, tb)


def linear_kernel(w_ref, b_ref, x_ref, o_ref):
    """w_ref: VMEM (1, K) f32 weight row (resident across steps);
    b_ref: SMEM (1,) f32 bias; x_ref: VMEM (tb, K) activation block;
    o_ref: VMEM (tb, 1) output block."""
    x = x_ref[...].astype(jnp.float32)          # (tb, K) on the VPU
    w = w_ref[...].astype(jnp.float32)          # (1, K), sublane-broadcast
    # One full-block multiply (VPU) + lane-axis reduce (idle XLU) instead of
    # 10 unrolled scalar FMAs; accumulation stays in f32.
    y = jnp.sum(x * w, axis=1, keepdims=True)   # (tb, 1) f32
    o_ref[...] = (y + b_ref[0]).astype(o_ref.dtype)


def mynet_forward(x, weight, bias):
    """x: (B, 10) f32; weight: (1, 10) f32 (PyTorch layout); bias: (1,) f32.
    Returns (B, 1) f32, matching torch.nn.Linear(10, 1)."""
    B, K = x.shape
    assert K == IN_FEATURES, f"expected in_features={IN_FEATURES}, got {K}"

    tb, num_tiles = _pick_batch_tile(B)

    w2d = weight.reshape(1, IN_FEATURES).astype(jnp.float32)
    b1d = bias.reshape(1).astype(jnp.float32)

    # Deepen input buffering only when the pipeline is long enough to benefit.
    x_spec_kwargs = {"pipeline_mode": pl.Buffered(3)} if num_tiles >= 3 else {}

    return pl.pallas_call(
        linear_kernel,
        out_shape=jax.ShapeDtypeStruct((B, 1), x.dtype),
        grid_spec=pltpu.PrefetchScalarGridSpec(
            num_scalar_prefetch=0,
            grid=(num_tiles,),
            in_specs=[
                # Weight row: tiny, lives in VMEM, same block every step.
                pl.BlockSpec((1, IN_FEATURES), lambda i: (0, 0)),
                # Bias: single scalar on the SMEM path.
                pl.BlockSpec(memory_space=pltpu.MemorySpace.SMEM),
                # Activations: (tb, 10) rows straight out of the original
                # (B, 10) array — no wrapper pad/transpose.  The last block
                # may run past B; OOB reads are unspecified and OOB writes
                # are dropped by Pallas.
                pl.BlockSpec((tb, IN_FEATURES), lambda i: (i, 0),
                             **x_spec_kwargs),
            ],
            out_specs=pl.BlockSpec((tb, 1), lambda i: (i, 0)),
        ),
        compiler_params=pltpu.CompilerParams(
            dimension_semantics=("parallel",),  # batch tiles are independent
        ),
    )(w2d, b1d, x)


if __name__ == "__main__":
    key = jax.random.PRNGKey(0)
    k_x, k_x2, k_w, k_b = jax.random.split(key, 4)

    IN, OUT = 10, 1
    bound = 1.0 / (IN ** 0.5)  # mimic torch.nn.Linear's U(-1/sqrt(IN), 1/sqrt(IN))
    weight = jax.random.uniform(k_w, (OUT, IN), jnp.float32, -bound, bound)
    bias = jax.random.uniform(k_b, (OUT,), jnp.float32, -bound, bound)

    # B=200: single exact tile.  B=37: exercises the partial-block tail
    # (rows 37..39 of the 40-row block are read-garbage / write-dropped).
    for B, kx in ((200, k_x), (37, k_x2)):
        x = jax.random.normal(kx, (B, IN), jnp.float32)
        out = jax.block_until_ready(mynet_forward(x, weight, bias))
        ref = x @ weight.T + bias
        assert out.shape == (B, OUT)
        assert jnp.allclose(out, ref, atol=1e-5, rtol=1e-5)

    print("KERNEL_OK")
</pallas_src>

<mosaic_0001>
module attributes {stable_mosaic.version = 11 : i64} {
  func.func @linear_kernel(%arg0: i32, %arg1: memref<1x10xf32, #tpu.memory_space<vmem>>, %arg2: memref<1xf32, #tpu.memory_space<smem>>, %arg3: memref<200x10xf32, #tpu.memory_space<vmem>>, %arg4: memref<200x1xf32, #tpu.memory_space<vmem>>) attributes {dimension_semantics = [#tpu.dimension_semantics<parallel>], iteration_bounds = array<i64: 1>, scalar_prefetch = 0 : i64, scratch_operands = 0 : i64, tpu.core_type = #tpu.core_type<tc>, window_params = [{pipeline_mode = #tpu.pipeline_mode<synchronous>, transform_indices = @transform_0, window_bounds = array<i64: 1, 10>}, {transform_indices = @transform_1, window_bounds = array<i64: 1>}, {transform_indices = @transform_2, window_bounds = array<i64: 200, 10>}, {transform_indices = @transform_3, window_bounds = array<i64: 200, 1>}]} {
    %c0 = arith.constant 0 : index
    %c0_0 = arith.constant 0 : index
    %0 = vector.load %arg3[%c0, %c0_0] : memref<200x10xf32, #tpu.memory_space<vmem>>, vector<200x10xf32>
    %c0_1 = arith.constant 0 : index
    %c0_2 = arith.constant 0 : index
    %1 = vector.load %arg1[%c0_1, %c0_2] : memref<1x10xf32, #tpu.memory_space<vmem>>, vector<1x10xf32>
    %2 = vector.broadcast %1 : vector<1x10xf32> to vector<200x10xf32>
    %3 = arith.mulf %0, %2 : vector<200x10xf32>
    %cst = arith.constant dense<0.000000e+00> : vector<200xf32>
    %4 = vector.multi_reduction <add>, %3, %cst [1] : vector<200x10xf32> to vector<200xf32>
    %5 = vector.shape_cast %4 : vector<200xf32> to vector<200x1xf32>
    %c0_3 = arith.constant 0 : index
    %6 = memref.load %arg2[%c0_3] : memref<1xf32, #tpu.memory_space<smem>>
    %7 = vector.broadcast %6 : f32 to vector<200x1xf32>
    %8 = arith.addf %5, %7 : vector<200x1xf32>
    %c0_4 = arith.constant 0 : index
    %c0_5 = arith.constant 0 : index
    %9 = vector.load %arg4[%c0_4, %c0_5] : memref<200x1xf32, #tpu.memory_space<vmem>>, vector<200x1xf32>
    tpu.vector_store %arg4[%c0_4, %c0_5], %8 {strides = array<i32>} : memref<200x1xf32, #tpu.memory_space<vmem>>, vector<200x1xf32>,
    return
  }
  func.func @transform_0(%arg0: i32) -> (i32, i32) {
    %c0_i32 = arith.constant 0 : i32
    %c0_i32_0 = arith.constant 0 : i32
    %c0_i32_1 = arith.constant 0 : i32
    return %c0_i32, %c0_i32_0 : i32, i32
  }
  func.func @transform_1(%arg0: i32) -> i32 {
    %c0_i32 = arith.constant 0 : i32
    %c0_i32_0 = arith.constant 0 : i32
    return %c0_i32 : i32
  }
  func.func @transform_2(%arg0: i32) -> (i32, i32) {
    %c0_i32 = arith.constant 0 : i32
    %c0_i32_0 = arith.constant 0 : i32
    return %arg0, %c0_i32 : i32, i32
  }
  func.func @transform_3(%arg0: i32) -> (i32, i32) {
    %c0_i32 = arith.constant 0 : i32
    %c0_i32_0 = arith.constant 0 : i32
    return %arg0, %c0_i32 : i32, i32
  }
}

</mosaic_0001>

<bundles_post_ra>
// kernel: tpu_custom_call.1
= control target key start
LH: loop header
LB: loop body
LE: loop exit
PB: predicated region body
PF: predicated region fallthrough
CT: control target
= control target key end

     0   :  { %vm69_vm0 = vcmask 80896   ;;  %vm172_vm1 = vcmask 7168   ;;  %s483_s0 = inlined_call_operand.vmem [shape: f32[1,10], index: 0, kind: input, shape index: {}]   ;;  %s484_s2 = inlined_call_operand.vmem [shape: f32[200,10], index: 2, kind: input, shape index: {}]   ;;  %s485_s1 = inlined_call_operand.<no memory space> [shape: f32[1], index: 1, kind: input, shape index: {}]   ;;  %s486_s3 = inlined_call_operand.vmem [shape: f32[200,1], index: 3, kind: output, shape index: {}]  }
   0x1   :  { %v15_v0 = vld [vmem:[%s484_s2] sm:$0xff]  ;;  %v17_v3 = vld [vmem:[%s484_s2 + $0x10] sm:$0xff]  ;;  %v16_v7 = vld [vmem:[%s484_s2 + $0x8] sm:$0xff] }
   0x2   :  { %v229_v1 = vld [vmem:[%s483_s0] ss:$0 sm:$0xff]  ;;  %v20_v8 = vld [vmem:[%s484_s2 + $0x28] sm:$0xff]  ;;  %v18_v12 = vld [vmem:[%s484_s2 + $0x18] sm:$0xff] }
   0x3   :  { %v19_v2 = vld [vmem:[%s484_s2 + $0x20] sm:$0xff]  ;;  %v44_v4 = vmul.f32 %v229_v1, %v15_v0  ;;  %v46_v6 = vmul.f32 %v229_v1, %v17_v3  ;;  %v45_v13 = vmul.f32 %v229_v1, %v16_v7  ;;  %v49_v14 = vmul.f32 %v229_v1, %v20_v8  ;;  %v21_v19 = vld [vmem:[%s484_s2 + $0x30] sm:$0xff]  ;;  %v22_v21 = vld [vmem:[%s484_s2 + $0x38] sm:$0xff] }
   0x4   :  { %v48_v5 = vmul.f32 %v229_v1, %v19_v2  ;;  %v47_v15 = vmul.f32 %v229_v1, %v18_v12  ;;  %v23_v20 = vld [vmem:[%s484_s2 + $0x40] sm:$0xff]  ;;  %v50_v22 = vmul.f32 %v229_v1, %v21_v19  ;;  %v51_v24 = vmul.f32 %v229_v1, %v22_v21  ;;  %v24_v28 = vld [vmem:[%s484_s2 + $0x48] sm:$0xff]  ;;  %v26_v29 = vld [vmem:[%s484_s2 + $0x58] sm:$0xff] }
   0x5   :  { %v70_v9 = vsel %vm69_vm0, %v44_v4, 0.0  ;;  %v76_v11 = vsel %vm69_vm0, %v46_v6, 0.0  ;;  %v73_v16 = vsel %vm69_vm0, %v45_v13, 0.0  ;;  %v85_v17 = vsel %vm69_vm0, %v49_v14, 0.0  ;;  %v25_v30 = vld [vmem:[%s484_s2 + $0x50] sm:$0xff]  ;;  %v27_v37 = vld [vmem:[%s484_s2 + $0x60] sm:$0xff] }
   0x6   :  { %v82_v10 = vsel %vm69_vm0, %v48_v5, 0.0  ;;  %71 = vadd.xlane.f32.xlu0 %v70_v9  ;;  %77 = vadd.xlane.f32.xlu1 %v76_v11  ;;  %v79_v18 = vsel %vm69_vm0, %v47_v15, 0.0  ;;  %v52_v23 = vmul.f32 %v229_v1, %v23_v20  ;;  %v88_v25 = vsel %vm69_vm0, %v50_v22, 0.0  ;;  %v29_v38 = vld [vmem:[%s484_s2 + $0x70] sm:$0xff]  ;;  %v28_v39 = vld [vmem:[%s484_s2 + $0x68] sm:$0xff]  ;;  %v39_v42 = vld [vmem:[%s484_s2 + $0xc0] sm:$0xff] }
   0x7   :  { %83 = vadd.xlane.f32.xlu2 %v82_v10  ;;  %v91_v27 = vsel %vm69_vm0, %v51_v24, 0.0  ;;  %v53_v31 = vmul.f32 %v229_v1, %v24_v28  ;;  %v55_v32 = vmul.f32 %v229_v1, %v26_v29  ;;  %v54_v33 = vmul.f32 %v229_v1, %v25_v30  ;;  %v30_v49 = vld [vmem:[%s484_s2 + $0x78] sm:$0xff]  ;;  %v32_v50 = vld [vmem:[%s484_s2 + $0x88] sm:$0xff]  ;;  %v31_v51 = vld [vmem:[%s484_s2 + $0x80] sm:$0xff] }
   0x8   :  { %v94_v26 = vsel %vm69_vm0, %v52_v23, 0.0  ;;  %v56_v40 = vmul.f32 %v229_v1, %v27_v37  ;;  %v58_v41 = vmul.f32 %v229_v1, %v29_v38  ;;  %v57_v43 = vmul.f32 %v229_v1, %v28_v39  ;;  %v33_v58 = vld [vmem:[%s484_s2 + $0x90] sm:$0xff]  ;;  %v35_v59 = vld [vmem:[%s484_s2 + $0xa0] sm:$0xff]  ;;  %v34_v60 = vld [vmem:[%s484_s2 + $0x98] sm:$0xff] }
   0x9   :  { %v97_v34 = vsel %vm69_vm0, %v53_v31, 0.0  ;;  %v103_v35 = vsel %vm69_vm0, %v55_v32, 0.0  ;;  %v100_v36 = vsel %vm69_vm0, %v54_v33, 0.0  ;;  %v68_v44 = vmul.f32 %v229_v1, %v39_v42  ;;  %v36_v4 = vld [vmem:[%s484_s2 + $0xa8] sm:$0xff]  ;;  %v38_v5 = vld [vmem:[%s484_s2 + $0xb8] sm:$0xff]  ;;  %v37_v6 = vld [vmem:[%s484_s2 + $0xb0] sm:$0xff] }
   0xa   :  { %v106_v46 = vsel %vm69_vm0, %v56_v40, 0.0  ;;  %v112_v47 = vsel %vm69_vm0, %v58_v41, 0.0  ;;  %v109_v48 = vsel %vm69_vm0, %v57_v43, 0.0  ;;  %v59_v52 = vmul.f32 %v229_v1, %v30_v49 }
   0xb   :  { %v142_v45 = vsel %vm69_vm0, %v68_v44, 0.0  ;;  %v61_v53 = vmul.f32 %v229_v1, %v32_v50  ;;  %v60_v54 = vmul.f32 %v229_v1, %v31_v51  ;;  %v62_v61 = vmul.f32 %v229_v1, %v33_v58 }
   0xc   :  { %v115_v55 = vsel %vm69_vm0, %v59_v52, 0.0  ;;  %v64_v62 = vmul.f32 %v229_v1, %v35_v59  ;;  %v63_v63 = vmul.f32 %v229_v1, %v34_v60  ;;  %v65_v7 = vmul.f32 %v229_v1, %v36_v4 }
   0xd   :  { %v121_v56 = vsel %vm69_vm0, %v61_v53, 0.0  ;;  %v118_v57 = vsel %vm69_vm0, %v60_v54, 0.0  ;;  %v124_v0 = vsel %vm69_vm0, %v62_v61, 0.0  ;;  %v67_v8 = vmul.f32 %v229_v1, %v38_v5 }
   0xe   :  { %74 = vadd.xlane.f32.xlu0 %v73_v16  ;;  %80 = vadd.xlane.f32.xlu1 %v79_v18  ;;  %v130_v2 = vsel %vm69_vm0, %v64_v62, 0.0  ;;  %v127_v3 = vsel %vm69_vm0, %v63_v63, 0.0  ;;  %v66_v9 = vmul.f32 %v229_v1, %v37_v6  ;;  %v133_v10 = vsel %vm69_vm0, %v65_v7, 0.0 }
   0xf   :  { %86 = vadd.xlane.f32.xlu2 %v85_v17  ;;  %v139_v11 = vsel %vm69_vm0, %v67_v8, 0.0  ;;  %v356_v13 = vstv %s485_s1 }
  0x10   :  { %v136_v12 = vsel %vm69_vm0, %v66_v9, 0.0 }
  0x16   :  { %89 = vadd.xlane.f32.xlu0 %v88_v25  ;;  %92 = vadd.xlane.f32.xlu1 %v91_v27 }
  0x17   :  { %95 = vadd.xlane.f32.xlu2 %v94_v26 }
  0x1e   :  { %98 = vadd.xlane.f32.xlu0 %v97_v34  ;;  %101 = vadd.xlane.f32.xlu1 %v100_v36 }
  0x1f   :  { %104 = vadd.xlane.f32.xlu2 %v103_v35 }
  0x26   :  { %107 = vadd.xlane.f32.xlu0 %v106_v46  ;;  %110 = vadd.xlane.f32.xlu1 %v109_v48 }
  0x27   :  { %113 = vadd.xlane.f32.xlu2 %v112_v47 }
  0x2e   :  { %116 = vadd.xlane.f32.xlu0 %v115_v55  ;;  %119 = vadd.xlane.f32.xlu1 %v118_v57 }
  0x2f   :  { %122 = vadd.xlane.f32.xlu2 %v121_v56 }
  0x36   :  { %125 = vadd.xlane.f32.xlu0 %v124_v0  ;;  %128 = vadd.xlane.f32.xlu1 %v127_v3 }
  0x37   :  { %131 = vadd.xlane.f32.xlu2 %v130_v2 }
  0x3e   :  { %134 = vadd.xlane.f32.xlu0 %v133_v10  ;;  %137 = vadd.xlane.f32.xlu1 %v136_v12 }
  0x3f   :  { %140 = vadd.xlane.f32.xlu2 %v139_v11 }
  0x46   :  { %143 = vadd.xlane.f32.xlu0 %v142_v45 }
  0x79   :  { %v72_v14 = vpop.xlane.xlu0 %71  ;;  %v78_v17 = vpop.xlane.xlu1 %77 }
  0x7a   :  { %v84_v15 = vpop.xlane.xlu2 %83  ;;  %v147_v1 = vadd.f32 %v356_v13, %v72_v14  ;;  %v149_v18 = vadd.f32 %v356_v13, %v78_v17 }
  0x7b   :  { %v151_v16 = vadd.f32 %v356_v13, %v84_v15 }
  0x7c   :  { %173 = vst.msk [vmem:[%s486_s3] sm:$0xff] %vm172_vm1, %v147_v1 }
  0x7d   :  { %177 = vst.msk [vmem:[%s486_s3 + $0x20] sm:$0xff] %vm172_vm1, %v151_v16 }
  0x7e   :  { %175 = vst.msk [vmem:[%s486_s3 + $0x10] sm:$0xff] %vm172_vm1, %v149_v18 }
  0x81   :  { %v75_v19 = vpop.xlane.xlu0 %74  ;;  %v81_v23 = vpop.xlane.xlu1 %80 }
  0x82   :  { %v87_v20 = vpop.xlane.xlu2 %86  ;;  %v148_v21 = vadd.f32 %v356_v13, %v75_v19  ;;  %v150_v24 = vadd.f32 %v356_v13, %v81_v23 }
  0x83   :  { %v152_v22 = vadd.f32 %v356_v13, %v87_v20 }
  0x84   :  { %174 = vst.msk [vmem:[%s486_s3 + $0x8] sm:$0xff] %vm172_vm1, %v148_v21 }
  0x85   :  { %178 = vst.msk [vmem:[%s486_s3 + $0x28] sm:$0xff] %vm172_vm1, %v152_v22 }
  0x86   :  { %176 = vst.msk [vmem:[%s486_s3 + $0x18] sm:$0xff] %vm172_vm1, %v150_v24 }
  0x89   :  { %v90_v25 = vpop.xlane.xlu0 %89  ;;  %v93_v29 = vpop.xlane.xlu1 %92 }
  0x8a   :  { %v96_v26 = vpop.xlane.xlu2 %95  ;;  %v153_v27 = vadd.f32 %v356_v13, %v90_v25  ;;  %v154_v30 = vadd.f32 %v356_v13, %v93_v29 }
  0x8b   :  { %v155_v28 = vadd.f32 %v356_v13, %v96_v26 }
  0x8c   :  { %179 = vst.msk [vmem:[%s486_s3 + $0x30] sm:$0xff] %vm172_vm1, %v153_v27 }
  0x8d   :  { %181 = vst.msk [vmem:[%s486_s3 + $0x40] sm:$0xff] %vm172_vm1, %v155_v28 }
  0x8e   :  { %180 = vst.msk [vmem:[%s486_s3 + $0x38] sm:$0xff] %vm172_vm1, %v154_v30 }
  0x91   :  { %v99_v31 = vpop.xlane.xlu0 %98  ;;  %v102_v35 = vpop.xlane.xlu1 %101 }
  0x92   :  { %v105_v32 = vpop.xlane.xlu2 %104  ;;  %v156_v33 = vadd.f32 %v356_v13, %v99_v31  ;;  %v157_v36 = vadd.f32 %v356_v13, %v102_v35 }
  0x93   :  { %v158_v34 = vadd.f32 %v356_v13, %v105_v32 }
  0x94   :  { %182 = vst.msk [vmem:[%s486_s3 + $0x48] sm:$0xff] %vm172_vm1, %v156_v33 }
  0x95   :  { %184 = vst.msk [vmem:[%s486_s3 + $0x58] sm:$0xff] %vm172_vm1, %v158_v34 }
  0x96   :  { %183 = vst.msk [vmem:[%s486_s3 + $0x50] sm:$0xff] %vm172_vm1, %v157_v36 }
  0x99   :  { %v108_v37 = vpop.xlane.xlu0 %107  ;;  %v111_v41 = vpop.xlane.xlu1 %110 }
  0x9a   :  { %v114_v38 = vpop.xlane.xlu2 %113  ;;  %v159_v39 = vadd.f32 %v356_v13, %v108_v37  ;;  %v160_v42 = vadd.f32 %v356_v13, %v111_v41 }
  0x9b   :  { %v161_v40 = vadd.f32 %v356_v13, %v114_v38 }
  0x9c   :  { %185 = vst.msk [vmem:[%s486_s3 + $0x60] sm:$0xff] %vm172_vm1, %v159_v39 }
  0x9d   :  { %187 = vst.msk [vmem:[%s486_s3 + $0x70] sm:$0xff] %vm172_vm1, %v161_v40 }
  0x9e   :  { %186 = vst.msk [vmem:[%s486_s3 + $0x68] sm:$0xff] %vm172_vm1, %v160_v42 }
  0xa1   :  { %v117_v43 = vpop.xlane.xlu0 %116  ;;  %v120_v47 = vpop.xlane.xlu1 %119 }
  0xa2   :  { %v123_v44 = vpop.xlane.xlu2 %122  ;;  %v162_v45 = vadd.f32 %v356_v13, %v117_v43  ;;  %v163_v48 = vadd.f32 %v356_v13, %v120_v47 }
  0xa3   :  { %v164_v46 = vadd.f32 %v356_v13, %v123_v44 }
  0xa4   :  { %188 = vst.msk [vmem:[%s486_s3 + $0x78] sm:$0xff] %vm172_vm1, %v162_v45 }
  0xa5   :  { %190 = vst.msk [vmem:[%s486_s3 + $0x88] sm:$0xff] %vm172_vm1, %v164_v46 }
  0xa6   :  { %189 = vst.msk [vmem:[%s486_s3 + $0x80] sm:$0xff] %vm172_vm1, %v163_v48 }
  0xa9   :  { %v126_v49 = vpop.xlane.xlu0 %125  ;;  %v129_v53 = vpop.xlane.xlu1 %128 }
  0xaa   :  { %v132_v50 = vpop.xlane.xlu2 %131  ;;  %v165_v51 = vadd.f32 %v356_v13, %v126_v49  ;;  %v166_v54 = vadd.f32 %v356_v13, %v129_v53 }
  0xab   :  { %v167_v52 = vadd.f32 %v356_v13, %v132_v50 }
  0xac   :  { %191 = vst.msk [vmem:[%s486_s3 + $0x90] sm:$0xff] %vm172_vm1, %v165_v51 }
  0xad   :  { %193 = vst.msk [vmem:[%s486_s3 + $0xa0] sm:$0xff] %vm172_vm1, %v167_v52 }
  0xae   :  { %192 = vst.msk [vmem:[%s486_s3 + $0x98] sm:$0xff] %vm172_vm1, %v166_v54 }
  0xb1   :  { %v135_v55 = vpop.xlane.xlu0 %134  ;;  %v138_v59 = vpop.xlane.xlu1 %137 }
  0xb2   :  { %v141_v56 = vpop.xlane.xlu2 %140  ;;  %v168_v57 = vadd.f32 %v356_v13, %v135_v55  ;;  %v169_v60 = vadd.f32 %v356_v13, %v138_v59 }
  0xb3   :  { %v170_v58 = vadd.f32 %v356_v13, %v141_v56 }
  0xb4   :  { %194 = vst.msk [vmem:[%s486_s3 + $0xa8] sm:$0xff] %vm172_vm1, %v168_v57 }
  0xb5   :  { %196 = vst.msk [vmem:[%s486_s3 + $0xb8] sm:$0xff] %vm172_vm1, %v170_v58 }
  0xb6   :  { %195 = vst.msk [vmem:[%s486_s3 + $0xb0] sm:$0xff] %vm172_vm1, %v169_v60 }
  0xb9   :  { %v144_v61 = vpop.xlane.xlu0 %143 }
  0xba   :  { %v171_v62 = vadd.f32 %v356_v13, %v144_v61 }
  0xbc   :  { %197 = vst.msk [vmem:[%s486_s3 + $0xc0] sm:$0xff] %vm172_vm1, %v171_v62 }

</bundles_post_ra>
